<compile_context>
chip_gen: v7x
topology: tpu7x:2x2x1
jax: 0.10.0
libtpu: 0.0.40
codegen_flags: <defaults>
</compile_context>

<pallas_src>
import math

import jax
import jax.numpy as jnp
from jax.experimental import pallas as pl
from jax.experimental.pallas import tpu as pltpu

SCALEw = 1.0
SCALEb = 1.0
_LOG_SQRT_2PI = 0.5 * math.log(2.0 * math.pi)
_PRIOR_CW = math.log(SCALEw) + _LOG_SQRT_2PI      # per-element prior constant (weights)
_PRIOR_CB = math.log(SCALEb) + _LOG_SQRT_2PI      # per-element prior constant (bias)
_INV_2SW2 = 1.0 / (2.0 * SCALEw * SCALEw)
_INV_2SB2 = 1.0 / (2.0 * SCALEb * SCALEb)


def _softplus(x):
    # Numerically stable softplus: max(x, 0) + log1p(exp(-|x|)).
    return jnp.maximum(x, 0.0) + jnp.log1p(jnp.exp(-jnp.abs(x)))


def _pair_tile(a, b):
    """(1, 8, 128) f32 tile holding scalar `a` at [0,0,0] and `b` at [0,0,1], zeros elsewhere."""
    sub = jax.lax.broadcasted_iota(jnp.int32, (1, 8, 128), 1)
    lane = jax.lax.broadcasted_iota(jnp.int32, (1, 8, 128), 2)
    row0 = sub == 0
    return jnp.where(row0 & (lane == 0), a, jnp.where(row0 & (lane == 1), b, 0.0))


def _bayesian_linear_kernel(eps_ref, x_ref, wmu_ref, wrho_ref, bmu_ref, brho_ref,
                            y_ref, logp_ref):
    k = pl.program_id(1)                      # In (reduction) tile index
    eps_w = eps_ref[0]
    eps_b = eps_ref[1]

    wmu = wmu_ref[...]                        # (t_out, t_k) — module-native (Out, In) layout
    wrho = wrho_ref[...]

    # TODO(synk): on v6e/v7x this 3-transcendental chain could run in bf16 on the EUP (~2x).
    w_sigma = _softplus(wrho)
    weight = wmu + w_sigma * eps_w            # sampled weight tile

    # Partial y for this (i, k) tile: contract the In axes of x (B, t_k) and weight (t_out, t_k).
    # Mosaic loads the RHS transposed into the MXU (no XLU transpose, no wrapper transpose);
    # output lanes = t_out (lane-dense stores).
    y_part = jax.lax.dot_general(
        x_ref[...], weight,
        dimension_numbers=(((1,), (1,)), ((), ())),
        preferred_element_type=jnp.float32)

    # Weight log-prob partials for this tile. Constants hoisted to scalars; the variational
    # quadratic (w - mu)^2 / (2 sigma^2) == eps^2 / 2 exactly under reparameterization, so only
    # sum(w^2) and sum(log sigma) need vector reductions.
    n_w = float(wmu.shape[0] * wmu.shape[1])
    lp_w = -(n_w * _PRIOR_CW) - jnp.sum(weight * weight) * _INV_2SW2
    lvp_w = -n_w * (_LOG_SQRT_2PI + 0.5 * eps_w * eps_w) - jnp.sum(jnp.log(w_sigma))

    @pl.when(k == 0)
    def _():
        # Bias belongs to this Out tile; sample and count it exactly once (at k == 0).
        bmu = bmu_ref[...]                    # (1, t_out)
        brho = brho_ref[...]
        b_sigma = _softplus(brho)
        bias = bmu + b_sigma * eps_b

        y_ref[...] = y_part + bias            # init the y accumulator (+ bias broadcast over B)

        n_b = float(bmu.shape[1])
        lp_b = -(n_b * _PRIOR_CB) - jnp.sum(bias * bias) * _INV_2SB2
        lvp_b = (-n_b * (_LOG_SQRT_2PI + 0.5 * eps_b * eps_b)
                 - jnp.sum(jnp.log(b_sigma)))
        logp_ref[...] = _pair_tile(lp_w + lp_b, lvp_w + lvp_b)

    @pl.when(k != 0)
    def _():
        y_ref[...] += y_part
        logp_ref[...] += _pair_tile(lp_w, lvp_w)


def _vmem_capacity_bytes():
    try:
        return int(pltpu.get_tpu_info().vmem_capacity_bytes)
    except Exception:
        return 64 * 1024 * 1024               # conservative (v7x per-core VMEM)


def _tile_candidates(n, cap):
    """Multiples of 128 dividing n (descending, capped), or [n] if n is not 128-aligned."""
    if n % 128 != 0:
        return [n]
    hi = min(n, max(128, cap))
    return [t for t in range(hi, 0, -128) if n % t == 0]


def _pick_tiles(in_features, out_features, max_tile_bytes):
    """Largest (t_out, t_k) whose f32 weight tile fits max_tile_bytes; t_out kept lane-dense."""
    outs = _tile_candidates(out_features, 2048)    # cap so large layers still yield >1 Out tile
    ks = _tile_candidates(in_features, 1 << 30)
    for t_out in outs:
        for t_k in ks:
            if t_out * t_k * 4 <= max_tile_bytes:
                return t_out, t_k
    # Non-128-aligned / tiny layers: fall back to full-extent dims.
    return outs[-1], ks[-1]


def bayesian_linear_forward(x, weight_mu, weight_rho, bias_mu, bias_rho, eps,
                            t_out=None, t_k=None):
    """BayesianLinear forward (sample=True, calculate_log_probs=True).

    Parameters keep the module-native layouts: weight_* is (Out, In), bias_* is (Out,).
    Returns (y, log_prior, log_variational_posterior).
    """
    B, In = x.shape
    Out, In_w = weight_mu.shape
    assert In_w == In

    bmu2 = bias_mu.reshape(1, Out)
    brho2 = bias_rho.reshape(1, Out)

    vmem_cap = _vmem_capacity_bytes()
    # Budget: 2 weight arrays x 2 pipeline buffers x tile ~= vmem_cap / 4 (plus small x/y/bias).
    max_tile_bytes = max(1 << 20, vmem_cap // 16)   # ~8 MiB @128 MiB VMEM, ~4 MiB @64 MiB (v7x)
    auto_out, auto_k = _pick_tiles(In, Out, max_tile_bytes)
    t_out = auto_out if t_out is None else t_out
    t_k = auto_k if t_k is None else t_k
    assert Out % t_out == 0 and In % t_k == 0
    n_out = Out // t_out
    n_k = In // t_k
    # TODO(synk): if In is huge and not 128-aligned, t_k falls back to full In and can exceed the
    # budget; pad In (and mask the reductions) to a 128 multiple in that case.

    vmem_limit = int(min(vmem_cap * 3 // 4, 96 * 1024 * 1024))

    grid_spec = pltpu.PrefetchScalarGridSpec(
        num_scalar_prefetch=1,                       # eps -> SMEM, passed first to kernel & maps
        grid=(n_out, n_k),                           # Out tiles (parallel) x In tiles (reduction)
        in_specs=[
            pl.BlockSpec((B, t_k), lambda i, k, eps: (0, k)),        # x
            pl.BlockSpec((t_out, t_k), lambda i, k, eps: (i, k)),    # weight_mu (streamed)
            pl.BlockSpec((t_out, t_k), lambda i, k, eps: (i, k)),    # weight_rho (streamed)
            pl.BlockSpec((1, t_out), lambda i, k, eps: (0, i)),      # bias_mu (fetched per Out tile)
            pl.BlockSpec((1, t_out), lambda i, k, eps: (0, i)),      # bias_rho
        ],
        out_specs=(
            pl.BlockSpec((B, t_out), lambda i, k, eps: (0, i)),      # y (accumulated over k)
            pl.BlockSpec((1, 8, 128), lambda i, k, eps: (i, 0, 0)),  # per-Out-tile [lp, lvp]
        ),
    )

    cost = pl.CostEstimate(
        flops=2 * B * In * Out + 8 * In * Out,
        transcendentals=3 * (In * Out + Out),
        bytes_accessed=4 * (2 * In * Out + n_out * B * In + B * Out + 4 * Out + n_out * 8 * 128),
    )

    y, partials = pl.pallas_call(
        _bayesian_linear_kernel,
        out_shape=(
            jax.ShapeDtypeStruct((B, Out), jnp.float32),
            jax.ShapeDtypeStruct((n_out, 8, 128), jnp.float32),
        ),
        grid_spec=grid_spec,
        compiler_params=pltpu.CompilerParams(
            # Out-tile axis has no cross-tile state (per-tile partial outputs) -> 'parallel'
            # (megacore-shardable on v7x). In axis is the reduction -> 'arbitrary', last.
            dimension_semantics=("parallel", "arbitrary"),
            vmem_limit_bytes=vmem_limit,
        ),
        cost_estimate=cost,
    )(eps, x, weight_mu, weight_rho, bmu2, brho2)

    log_prior = jnp.sum(partials[:, 0, 0])
    log_variational_posterior = jnp.sum(partials[:, 0, 1])
    return y, log_prior, log_variational_posterior


def _reference(x, weight_mu, weight_rho, bias_mu, bias_rho, eps):
    """Pure-JAX mirror of the PyTorch module (literal form)."""
    w_sigma = jnp.log1p(jnp.exp(weight_rho))
    b_sigma = jnp.log1p(jnp.exp(bias_rho))
    weight = weight_mu + w_sigma * eps[0]
    bias = bias_mu + b_sigma * eps[1]
    y = jnp.dot(x, weight.T, precision=jax.lax.Precision.HIGHEST) + bias
    lp = (jnp.sum(-(math.log(SCALEw) + _LOG_SQRT_2PI) - weight ** 2 / (2 * SCALEw ** 2))
          + jnp.sum(-(math.log(SCALEb) + _LOG_SQRT_2PI) - bias ** 2 / (2 * SCALEb ** 2)))
    lvp = (jnp.sum(-_LOG_SQRT_2PI - jnp.log(w_sigma) - (weight - weight_mu) ** 2 / (2 * w_sigma ** 2))
           + jnp.sum(-_LOG_SQRT_2PI - jnp.log(b_sigma) - (bias - bias_mu) ** 2 / (2 * b_sigma ** 2)))
    return y, lp, lvp


def _make_inputs(key, batch, in_features, out_features):
    k_wmu, k_wrho, k_bmu, k_brho, k_x, k_eps = jax.random.split(key, 6)
    # Parameter init matching the module's __init__ distributions.
    weight_mu = jax.random.uniform(k_wmu, (out_features, in_features),
                                   minval=-0.2, maxval=0.2, dtype=jnp.float32)
    weight_rho = jax.random.uniform(k_wrho, (out_features, in_features),
                                    minval=-5.0, maxval=-4.0, dtype=jnp.float32)
    bias_mu = jax.random.uniform(k_bmu, (out_features,),
                                 minval=-0.2, maxval=0.2, dtype=jnp.float32)
    bias_rho = jax.random.uniform(k_brho, (out_features,),
                                  minval=-5.0, maxval=-4.0, dtype=jnp.float32)
    x = jax.random.normal(k_x, (batch, in_features), dtype=jnp.float32)
    # Scalar epsilons for the reparameterization trick (torch samples a scalar N(0,1) here).
    eps = jax.random.normal(k_eps, (2,), dtype=jnp.float32)
    return x, weight_mu, weight_rho, bias_mu, bias_rho, eps


def _check(key, batch, in_features, out_features, y_tol, logp_rtol, t_out=None, t_k=None):
    args = _make_inputs(key, batch, in_features, out_features)
    y, lp, lvp = bayesian_linear_forward(*args, t_out=t_out, t_k=t_k)
    jax.block_until_ready((y, lp, lvp))
    y_ref, lp_ref, lvp_ref = _reference(*args)
    assert bool(jnp.allclose(y, y_ref, rtol=y_tol, atol=y_tol)), "y mismatch"
    assert bool(jnp.allclose(lp, lp_ref, rtol=logp_rtol, atol=1e-2)), "log_prior mismatch"
    assert bool(jnp.allclose(lvp, lvp_ref, rtol=logp_rtol, atol=1e-2)), "log_var_posterior mismatch"


if __name__ == "__main__":
    key = jax.random.PRNGKey(0)
    k_small, k_big = jax.random.split(key)

    # Small shapes matching typical module usage (single tile, grid=(1, 1)).
    _check(k_small, batch=8, in_features=32, out_features=64, y_tol=1e-5, logp_rtol=1e-4)

    # Larger lane-dense shapes with explicit tiles forcing grid=(3, 4): exercises the parallel
    # Out-tile axis (per-tile log-prob partials) and the In-reduction y accumulation.
    _check(k_big, batch=16, in_features=512, out_features=768, y_tol=1e-4, logp_rtol=1e-4,
           t_out=256, t_k=128)

    print("KERNEL_OK")
</pallas_src>

<mosaic_0001>
module attributes {stable_mosaic.version = 11 : i64} {
  func.func @_bayesian_linear_kernel(%arg0: i32, %arg1: i32, %arg2: memref<2xf32, #tpu.memory_space<smem>>, %arg3: memref<8x32xf32, #tpu.memory_space<vmem>>, %arg4: memref<64x32xf32, #tpu.memory_space<vmem>>, %arg5: memref<64x32xf32, #tpu.memory_space<vmem>>, %arg6: memref<1x64xf32, #tpu.memory_space<vmem>>, %arg7: memref<1x64xf32, #tpu.memory_space<vmem>>, %arg8: memref<8x64xf32, #tpu.memory_space<vmem>>, %arg9: memref<1x8x128xf32, #tpu.memory_space<vmem>>) attributes {dimension_semantics = [#tpu.dimension_semantics<parallel>, #tpu.dimension_semantics<arbitrary>], iteration_bounds = array<i64: 1, 1>, scalar_prefetch = 1 : i64, scratch_operands = 0 : i64, tpu.core_type = #tpu.core_type<tc>, window_params = [{transform_indices = @transform_0, window_bounds = array<i64: 8, 32>}, {transform_indices = @transform_1, window_bounds = array<i64: 64, 32>}, {transform_indices = @transform_2, window_bounds = array<i64: 64, 32>}, {transform_indices = @transform_3, window_bounds = array<i64: 1, 64>}, {transform_indices = @transform_4, window_bounds = array<i64: 1, 64>}, {transform_indices = @transform_5, window_bounds = array<i64: 8, 64>}, {transform_indices = @transform_6, window_bounds = array<i64: 1, 8, 128>}]} {
    %c0 = arith.constant 0 : index
    %0 = memref.load %arg2[%c0] : memref<2xf32, #tpu.memory_space<smem>>
    %c1 = arith.constant 1 : index
    %1 = memref.load %arg2[%c1] : memref<2xf32, #tpu.memory_space<smem>>
    %c0_0 = arith.constant 0 : index
    %c0_1 = arith.constant 0 : index
    %2 = vector.load %arg4[%c0_0, %c0_1] : memref<64x32xf32, #tpu.memory_space<vmem>>, vector<64x32xf32>
    %c0_2 = arith.constant 0 : index
    %c0_3 = arith.constant 0 : index
    %3 = vector.load %arg5[%c0_2, %c0_3] : memref<64x32xf32, #tpu.memory_space<vmem>>, vector<64x32xf32>
    %cst = arith.constant 0.000000e+00 : f32
    %4 = vector.broadcast %cst : f32 to vector<64x32xf32>
    %5 = arith.maximumf %3, %4 : vector<64x32xf32>
    %6 = math.absf %3 : vector<64x32xf32>
    %cst_4 = arith.constant 0.000000e+00 : f32
    %7 = vector.broadcast %cst_4 : f32 to vector<64x32xf32>
    %8 = arith.subf %7, %6 : vector<64x32xf32>
    %9 = math.exp %8 : vector<64x32xf32>
    %10 = math.log1p %9 : vector<64x32xf32>
    %11 = arith.addf %5, %10 : vector<64x32xf32>
    %12 = vector.broadcast %0 : f32 to vector<64x32xf32>
    %13 = arith.mulf %11, %12 : vector<64x32xf32>
    %14 = arith.addf %2, %13 : vector<64x32xf32>
    %c0_5 = arith.constant 0 : index
    %c0_6 = arith.constant 0 : index
    %15 = vector.load %arg3[%c0_5, %c0_6] : memref<8x32xf32, #tpu.memory_space<vmem>>, vector<8x32xf32>
    %cst_7 = arith.constant dense<0.000000e+00> : vector<8x64xf32>
    %16 = tpu.matmul %15, %14, %cst_7 {dimension_numbers = #tpu.dot_dimension_numbers<[1], [1], [0], [0], [0, 0, 1, 0], [], []>} : vector<8x32xf32>, vector<64x32xf32>, vector<8x64xf32> -> vector<8x64xf32>
    %17 = arith.mulf %14, %14 : vector<64x32xf32>
    %18 = vector.shape_cast %17 : vector<64x32xf32> to vector<1x64x32xf32>
    %cst_8 = arith.constant dense<0.000000e+00> : vector<1xf32>
    %19 = vector.multi_reduction <add>, %18, %cst_8 [1, 2] : vector<1x64x32xf32> to vector<1xf32>
    %20 = vector.shape_cast %19 : vector<1xf32> to vector<1x1x1xf32>
    %21 = vector.extract %20[0, 0, 0] : f32 from vector<1x1x1xf32>
    %cst_9 = arith.constant 5.000000e-01 : f32
    %22 = arith.mulf %21, %cst_9 : f32
    %cst_10 = arith.constant -1881.98608 : f32
    %23 = arith.subf %cst_10, %22 : f32
    %cst_11 = arith.constant 5.000000e-01 : f32
    %24 = arith.mulf %cst_11, %0 : f32
    %25 = arith.mulf %24, %0 : f32
    %cst_12 = arith.constant 0.918938517 : f32
    %26 = arith.addf %cst_12, %25 : f32
    %cst_13 = arith.constant -2.048000e+03 : f32
    %27 = arith.mulf %cst_13, %26 : f32
    %28 = math.log %11 : vector<64x32xf32>
    %29 = vector.shape_cast %28 : vector<64x32xf32> to vector<1x64x32xf32>
    %cst_14 = arith.constant dense<0.000000e+00> : vector<1xf32>
    %30 = vector.multi_reduction <add>, %29, %cst_14 [1, 2] : vector<1x64x32xf32> to vector<1xf32>
    %31 = vector.shape_cast %30 : vector<1xf32> to vector<1x1x1xf32>
    %32 = vector.extract %31[0, 0, 0] : f32 from vector<1x1x1xf32>
    %33 = arith.subf %27, %32 : f32
    %c0_i32 = arith.constant 0 : i32
    %34 = arith.cmpi eq, %arg1, %c0_i32 : i32
    %35 = arith.extui %34 : i1 to i32
    %c0_i32_15 = arith.constant 0 : i32
    %36 = arith.cmpi ne, %35, %c0_i32_15 : i32
    scf.if %36 {
      %c0_18 = arith.constant 0 : index
      %c0_19 = arith.constant 0 : index
      %40 = vector.load %arg6[%c0_18, %c0_19] : memref<1x64xf32, #tpu.memory_space<vmem>>, vector<1x64xf32>
      %c0_20 = arith.constant 0 : index
      %c0_21 = arith.constant 0 : index
      %41 = vector.load %arg7[%c0_20, %c0_21] : memref<1x64xf32, #tpu.memory_space<vmem>>, vector<1x64xf32>
      %cst_22 = arith.constant 0.000000e+00 : f32
      %42 = vector.broadcast %cst_22 : f32 to vector<1x64xf32>
      %43 = arith.maximumf %41, %42 : vector<1x64xf32>
      %44 = math.absf %41 : vector<1x64xf32>
      %cst_23 = arith.constant 0.000000e+00 : f32
      %45 = vector.broadcast %cst_23 : f32 to vector<1x64xf32>
      %46 = arith.subf %45, %44 : vector<1x64xf32>
      %47 = math.exp %46 : vector<1x64xf32>
      %48 = math.log1p %47 : vector<1x64xf32>
      %49 = arith.addf %43, %48 : vector<1x64xf32>
      %50 = vector.broadcast %1 : f32 to vector<1x64xf32>
      %51 = arith.mulf %49, %50 : vector<1x64xf32>
      %52 = arith.addf %40, %51 : vector<1x64xf32>
      %53 = vector.broadcast %52 : vector<1x64xf32> to vector<8x64xf32>
      %54 = arith.addf %16, %53 : vector<8x64xf32>
      %c0_24 = arith.constant 0 : index
      %c0_25 = arith.constant 0 : index
      %55 = vector.load %arg8[%c0_24, %c0_25] : memref<8x64xf32, #tpu.memory_space<vmem>>, vector<8x64xf32>
      tpu.vector_store %arg8[%c0_24, %c0_25], %54 {strides = array<i32>} : memref<8x64xf32, #tpu.memory_space<vmem>>, vector<8x64xf32>,
      %56 = arith.mulf %52, %52 : vector<1x64xf32>
      %57 = vector.shape_cast %56 : vector<1x64xf32> to vector<1x1x64xf32>
      %cst_26 = arith.constant dense<0.000000e+00> : vector<1xf32>
      %58 = vector.multi_reduction <add>, %57, %cst_26 [1, 2] : vector<1x1x64xf32> to vector<1xf32>
      %59 = vector.shape_cast %58 : vector<1xf32> to vector<1x1x1xf32>
      %60 = vector.extract %59[0, 0, 0] : f32 from vector<1x1x1xf32>
      %cst_27 = arith.constant 5.000000e-01 : f32
      %61 = arith.mulf %60, %cst_27 : f32
      %cst_28 = arith.constant -58.8120651 : f32
      %62 = arith.subf %cst_28, %61 : f32
      %cst_29 = arith.constant 5.000000e-01 : f32
      %63 = arith.mulf %cst_29, %1 : f32
      %64 = arith.mulf %63, %1 : f32
      %cst_30 = arith.constant 0.918938517 : f32
      %65 = arith.addf %cst_30, %64 : f32
      %cst_31 = arith.constant -6.400000e+01 : f32
      %66 = arith.mulf %cst_31, %65 : f32
      %67 = math.log %49 : vector<1x64xf32>
      %68 = vector.shape_cast %67 : vector<1x64xf32> to vector<1x1x64xf32>
      %cst_32 = arith.constant dense<0.000000e+00> : vector<1xf32>
      %69 = vector.multi_reduction <add>, %68, %cst_32 [1, 2] : vector<1x1x64xf32> to vector<1xf32>
      %70 = vector.shape_cast %69 : vector<1xf32> to vector<1x1x1xf32>
      %71 = vector.extract %70[0, 0, 0] : f32 from vector<1x1x1xf32>
      %72 = arith.subf %66, %71 : f32
      %73 = arith.addf %23, %62 : f32
      %74 = arith.addf %33, %72 : f32
      %75 = tpu.iota {dimensions = array<i32: 1>} : vector<1x8x128xi32>
      %76 = tpu.iota {dimensions = array<i32: 2>} : vector<1x8x128xi32>
      %c0_i32_33 = arith.constant 0 : i32
      %77 = vector.broadcast %c0_i32_33 : i32 to vector<1x8x128xi32>
      %78 = arith.cmpi eq, %75, %77 : vector<1x8x128xi32>
      %c0_i32_34 = arith.constant 0 : i32
      %79 = vector.broadcast %c0_i32_34 : i32 to vector<1x8x128xi32>
      %80 = arith.cmpi eq, %76, %79 : vector<1x8x128xi32>
      %81 = arith.andi %78, %80 : vector<1x8x128xi1>
      %c1_i32 = arith.constant 1 : i32
      %82 = vector.broadcast %c1_i32 : i32 to vector<1x8x128xi32>
      %83 = arith.cmpi eq, %76, %82 : vector<1x8x128xi32>
      %84 = arith.andi %78, %83 : vector<1x8x128xi1>
      %cst_35 = arith.constant 0.000000e+00 : f32
      %85 = vector.broadcast %74 : f32 to vector<1x8x128xf32>
      %86 = vector.broadcast %cst_35 : f32 to vector<1x8x128xf32>
      %87 = arith.select %84, %85, %86 : vector<1x8x128xi1>, vector<1x8x128xf32>
      %88 = vector.broadcast %73 : f32 to vector<1x8x128xf32>
      %89 = arith.select %81, %88, %87 : vector<1x8x128xi1>, vector<1x8x128xf32>
      %c0_36 = arith.constant 0 : index
      %c0_37 = arith.constant 0 : index
      %c0_38 = arith.constant 0 : index
      %90 = vector.load %arg9[%c0_36, %c0_37, %c0_38] : memref<1x8x128xf32, #tpu.memory_space<vmem>>, vector<1x8x128xf32>
      tpu.vector_store %arg9[%c0_36, %c0_37, %c0_38], %89 {strides = array<i32>} : memref<1x8x128xf32, #tpu.memory_space<vmem>>, vector<1x8x128xf32>,
    } else {
    }
    %c0_i32_16 = arith.constant 0 : i32
    %37 = arith.cmpi ne, %arg1, %c0_i32_16 : i32
    %38 = arith.extui %37 : i1 to i32
    %c0_i32_17 = arith.constant 0 : i32
    %39 = arith.cmpi ne, %38, %c0_i32_17 : i32
    scf.if %39 {
      %c0_18 = arith.constant 0 : index
      %c0_19 = arith.constant 0 : index
      %40 = vector.load %arg8[%c0_18, %c0_19] : memref<8x64xf32, #tpu.memory_space<vmem>>, vector<8x64xf32>
      %41 = arith.addf %40, %16 : vector<8x64xf32>
      %c0_20 = arith.constant 0 : index
      %c0_21 = arith.constant 0 : index
      %42 = vector.load %arg8[%c0_20, %c0_21] : memref<8x64xf32, #tpu.memory_space<vmem>>, vector<8x64xf32>
      tpu.vector_store %arg8[%c0_20, %c0_21], %41 {strides = array<i32>} : memref<8x64xf32, #tpu.memory_space<vmem>>, vector<8x64xf32>,
      %c0_22 = arith.constant 0 : index
      %c0_23 = arith.constant 0 : index
      %c0_24 = arith.constant 0 : index
      %43 = vector.load %arg9[%c0_22, %c0_23, %c0_24] : memref<1x8x128xf32, #tpu.memory_space<vmem>>, vector<1x8x128xf32>
      %44 = tpu.iota {dimensions = array<i32: 1>} : vector<1x8x128xi32>
      %45 = tpu.iota {dimensions = array<i32: 2>} : vector<1x8x128xi32>
      %c0_i32_25 = arith.constant 0 : i32
      %46 = vector.broadcast %c0_i32_25 : i32 to vector<1x8x128xi32>
      %47 = arith.cmpi eq, %44, %46 : vector<1x8x128xi32>
      %c0_i32_26 = arith.constant 0 : i32
      %48 = vector.broadcast %c0_i32_26 : i32 to vector<1x8x128xi32>
      %49 = arith.cmpi eq, %45, %48 : vector<1x8x128xi32>
      %50 = arith.andi %47, %49 : vector<1x8x128xi1>
      %c1_i32 = arith.constant 1 : i32
      %51 = vector.broadcast %c1_i32 : i32 to vector<1x8x128xi32>
      %52 = arith.cmpi eq, %45, %51 : vector<1x8x128xi32>
      %53 = arith.andi %47, %52 : vector<1x8x128xi1>
      %cst_27 = arith.constant 0.000000e+00 : f32
      %54 = vector.broadcast %33 : f32 to vector<1x8x128xf32>
      %55 = vector.broadcast %cst_27 : f32 to vector<1x8x128xf32>
      %56 = arith.select %53, %54, %55 : vector<1x8x128xi1>, vector<1x8x128xf32>
      %57 = vector.broadcast %23 : f32 to vector<1x8x128xf32>
      %58 = arith.select %50, %57, %56 : vector<1x8x128xi1>, vector<1x8x128xf32>
      %59 = arith.addf %43, %58 : vector<1x8x128xf32>
      %c0_28 = arith.constant 0 : index
      %c0_29 = arith.constant 0 : index
      %c0_30 = arith.constant 0 : index
      %60 = vector.load %arg9[%c0_28, %c0_29, %c0_30] : memref<1x8x128xf32, #tpu.memory_space<vmem>>, vector<1x8x128xf32>
      tpu.vector_store %arg9[%c0_28, %c0_29, %c0_30], %59 {strides = array<i32>} : memref<1x8x128xf32, #tpu.memory_space<vmem>>, vector<1x8x128xf32>,
    } else {
    }
    return
  }
  func.func @transform_0(%arg0: i32, %arg1: i32, %arg2: memref<2xf32, #tpu.memory_space<smem>>) -> (i32, i32) {
    %c0_i32 = arith.constant 0 : i32
    %c0_i32_0 = arith.constant 0 : i32
    return %c0_i32, %arg1 : i32, i32
  }
  func.func @transform_1(%arg0: i32, %arg1: i32, %arg2: memref<2xf32, #tpu.memory_space<smem>>) -> (i32, i32) {
    %c0_i32 = arith.constant 0 : i32
    return %arg0, %arg1 : i32, i32
  }
  func.func @transform_2(%arg0: i32, %arg1: i32, %arg2: memref<2xf32, #tpu.memory_space<smem>>) -> (i32, i32) {
    %c0_i32 = arith.constant 0 : i32
    return %arg0, %arg1 : i32, i32
  }
  func.func @transform_3(%arg0: i32, %arg1: i32, %arg2: memref<2xf32, #tpu.memory_space<smem>>) -> (i32, i32) {
    %c0_i32 = arith.constant 0 : i32
    %c0_i32_0 = arith.constant 0 : i32
    return %c0_i32, %arg0 : i32, i32
  }
  func.func @transform_4(%arg0: i32, %arg1: i32, %arg2: memref<2xf32, #tpu.memory_space<smem>>) -> (i32, i32) {
    %c0_i32 = arith.constant 0 : i32
    %c0_i32_0 = arith.constant 0 : i32
    return %c0_i32, %arg0 : i32, i32
  }
  func.func @transform_5(%arg0: i32, %arg1: i32, %arg2: memref<2xf32, #tpu.memory_space<smem>>) -> (i32, i32) {
    %c0_i32 = arith.constant 0 : i32
    %c0_i32_0 = arith.constant 0 : i32
    return %c0_i32, %arg0 : i32, i32
  }
  func.func @transform_6(%arg0: i32, %arg1: i32, %arg2: memref<2xf32, #tpu.memory_space<smem>>) -> (i32, i32, i32) {
    %c0_i32 = arith.constant 0 : i32
    %c0_i32_0 = arith.constant 0 : i32
    %c0_i32_1 = arith.constant 0 : i32
    return %arg0, %c0_i32, %c0_i32_0 : i32, i32, i32
  }
}

</mosaic_0001>

<bundles_post_ra>
// kernel: tpu_custom_call.1
= control target key start
LH: loop header
LB: loop body
LE: loop exit
PB: predicated region body
PF: predicated region fallthrough
CT: control target
= control target key end

     0   :  { %s994_s0 = inlined_call_operand.vmem [shape: f32[2], index: 0, kind: input, shape index: {}]   ;;  %s995_s1 = inlined_call_operand.vmem [shape: f32[8,32], index: 1, kind: input, shape index: {}]   ;;  %s996_s2 = inlined_call_operand.vmem [shape: f32[64,32], index: 2, kind: input, shape index: {}]   ;;  %s997_s3 = inlined_call_operand.vmem [shape: f32[64,32], index: 3, kind: input, shape index: {}]   ;;  %s998_s4 = inlined_call_operand.vmem [shape: f32[1,64], index: 4, kind: input, shape index: {}]   ;;  %s999_s5 = inlined_call_operand.vmem [shape: f32[1,64], index: 5, kind: input, shape index: {}]   ;;  %s1000_s6 = inlined_call_operand.hbm [shape: f32[8,64], index: 6, kind: output, shape index: {0}]   ;;  %s1001_s7 = inlined_call_operand.hbm [shape: f32[1,8,128], index: 7, kind: output, shape index: {1}]  }
   0x1   :  { %s13_s26 = sshll.u32 %s994_s0, 4  ;;  %s14_s26 = int_to_ptr.vmem [resolvable:$true] %s13_s26 }
   0x2   :  { %s618_s27 = scalar_lea.vmem %s14_s26, 16  ;;  %p623_p1 = scmp.lt.s32.totalorder %s14_s26, %s14_s26 }
   0x3   :  { %p619_p0 = scmp.ne.s32.totalorder %s14_s26, %s618_s27  ;;  %p624_p2 = scmp.lt.s32.totalorder %s618_s27, %s618_s27 }
   0x5   :  { %p625_p3 = por %p624_p2, %p623_p1 }
   0x7   :  { %p626_p4 = pnand %p625_p3, %p619_p0 }
   0x9   :  { %629 = shalt.err (!%p626_p4)  }
   0xa   :  { %s680_s28 = smov [#allocation3]  }
   0xb   :  { %16 = dma.vmem_to_smem %s14_s26, 16, %s680_s28, [#allocation2] }
   0xc   :  { %674 = dma.done.wait [#allocation2], 16 }
   0xd   :  { %675 = vsyncadd [#allocation2], 4294967280 }
   0xe   :  { %18 = sfence }
   0xf   :  { %19 = vsyncpa [#allocation5], 0  ;;  %v732_v0 = vld [vmem:[%s997_s3] sm:$0xff]  ;;  %v681_v1 = vmov 0.0|0.0   ;;  %v738_v2 = vld [vmem:[%s997_s3 + $0x8] sm:$0xff]  ;;  %s777_s21 = sld [smem:[#allocation3]] }
  0x10   :  { %534 = vmatprep.subr.bf16.mxu0 %v681_v1  ;;  %v57_v3 = vand.u32 2147483647, %v732_v0  ;;  %v58_v4 = vand.u32 2147483647, %v738_v2  ;;  %v745_v5 = vld [vmem:[%s997_s3 + $0x10] sm:$0xff]  ;;  %v750_v7 = vld [vmem:[%s997_s3 + $0x18] sm:$0xff] }
  0x11   :  { %v59_v8 = vand.u32 2147483647, %v745_v5  ;;  %v60_v10 = vand.u32 2147483647, %v750_v7  ;;  %v757_v11 = vld [vmem:[%s997_s3 + $0x20] sm:$0xff]  ;;  %v762_v14 = vld [vmem:[%s997_s3 + $0x28] sm:$0xff] }
  0x12   :  { %v65_v6 = vsub.f32 0.0, %v57_v3  ;;  %v66_v9 = vsub.f32 0.0, %v58_v4  ;;  %v767_v17 = vld [vmem:[%s997_s3 + $0x30] sm:$0xff]  ;;  %v61_v19 = vand.u32 2147483647, %v757_v11  ;;  %v774_v22 = vld [vmem:[%s997_s3 + $0x38] sm:$0xff] }
  0x13   :  { %v67_v13 = vsub.f32 0.0, %v59_v8  ;;  %v68_v16 = vsub.f32 0.0, %v60_v10  ;;  %v62_v20 = vand.u32 2147483647, %v762_v14  ;;  %v63_v23 = vand.u32 2147483647, %v767_v17 }
  0x14   :  { %v73_v12 = vmul.f32 1.442695, %v65_v6  ;;  %v75_v15 = vmul.f32 1.442695, %v66_v9  ;;  %v69_v24 = vsub.f32 0.0, %v61_v19 }
  0x15   :  { %v77_v18 = vmul.f32 1.442695, %v67_v13  ;;  %v79_v21 = vmul.f32 1.442695, %v68_v16  ;;  %v70_v25 = vsub.f32 0.0, %v62_v20  ;;  %v71_v27 = vsub.f32 0.0, %v63_v23 }
  0x16   :  { %564 = vpow2.f32 %v73_v12  ;;  %v64_v26 = vand.u32 2147483647, %v774_v22  ;;  %v81_v28 = vmul.f32 1.442695, %v69_v24  ;;  %v783_v30 = vld [vmem:[%s999_s5] sm:$0x1] }
  0x17   :  { %566 = vpow2.f32 %v75_v15  ;;  %v83_v29 = vmul.f32 1.442695, %v70_v25  ;;  %v85_v32 = vmul.f32 1.442695, %v71_v27  ;;  %v371_v33 = vand.u32 2147483647, %v783_v30 }
  0x18   :  { %568 = vpow2.f32 %v77_v18  ;;  %v72_v31 = vsub.f32 0.0, %v64_v26 }
  0x19   :  { %570 = vpow2.f32 %v79_v21 }
  0x1a   :  { %572 = vpow2.f32 %v81_v28 }
  0x1b   :  { %20 = vsyncpa [#allocation7], 0  ;;  %574 = vpow2.f32 %v83_v29  ;;  %v87_v34 = vmul.f32 1.442695, %v72_v31  ;;  %v372_v35 = vsub.f32 0.0, %v371_v33  ;;  %vm682_vm0 = vmmov 0  }
  0x1c   :  { %v683_v36 = vmov 0.0   ;;  %v49_v37 = vmax.f32 %v732_v0, 0.0  ;;  %576 = vpow2.f32 %v85_v32  ;;  %v50_v38 = vmax.f32 %v738_v2, 0.0  ;;  %v33_v62 = vld [vmem:[%s996_s2] sm:$0xff]  ;;  %v36_v29 = vld [vmem:[%s996_s2 + $0x18] sm:$0xff]  ;;  %s886_s30 = sld [smem:[#allocation3 + $0x1]] }
  0x1d   :  { %531 = vmatprep.mubr.msk.f32.mxu0 %vm682_vm0, %v683_v36  ;;  %v51_v39 = vmax.f32 %v745_v5, 0.0  ;;  %578 = vpow2.f32 %v87_v34  ;;  %v373_v40 = vmul.f32 1.442695, %v372_v35  ;;  %v790_v42 = vstv %s777_s21  ;;  %s684_s9 = smov [#allocation4]   ;;  %s685_s12 = smov [#allocation6]  }
  0x1e   :  { %v52_v43 = vmax.f32 %v750_v7, 0.0  ;;  %v53_v44 = vmax.f32 %v757_v11, 0.0  ;;  %v54_v45 = vmax.f32 %v762_v14, 0.0  ;;  %v55_v54 = vmax.f32 %v767_v17, 0.0  ;;  %s474_s10 = sshll.u32 %s684_s9, 4  ;;  %s484_s13 = sshll.u32 %s685_s12, 4  ;;  %s475_s10 = int_to_ptr.vmem [resolvable:$true] %s474_s10  ;;  %s485_s13 = int_to_ptr.vmem [resolvable:$true] %s484_s13 }
  0x1f   :  { %580 = vpow2.f32 %v373_v40  ;;  %v56_v58 = vmax.f32 %v774_v22, 0.0  ;;  %v370_v61 = vmax.f32 %v783_v30, 0.0  ;;  %vm187_vm5 = vcmask 261120   ;;  %s630_s14 = scalar_lea.vmem %s475_s10, 128  ;;  %p635_p6 = scmp.lt.s32.totalorder %s475_s10, %s475_s10 }
  0x20   :  { %v565_v41 = vpop.eup %564  ;;  %vm876_vm11 = vmpackc.low %vm187_vm5, %vm187_vm5  ;;  %vm398_vm12 = vcmask 516096   ;;  %p631_p5 = scmp.ne.s32.totalorder %s475_s10, %s630_s14  ;;  %p636_p7 = scmp.lt.s32.totalorder %s630_s14, %s630_s14 }
  0x21   :  { %v567_v46 = vpop.eup %566  ;;  %v89_v47 = vadd.f32 1.0, %v565_v41  ;;  %v92_v48 = vmul.f32 -0.5, %v565_v41  ;;  %v95_v49 = vand.u32 2147483647, %v565_v41 }
  0x22   :  { %v569_v50 = vpop.eup %568  ;;  %v98_v51 = vadd.f32 1.0, %v567_v46  ;;  %v101_v52 = vmul.f32 -0.5, %v567_v46  ;;  %v104_v53 = vand.u32 2147483647, %v567_v46  ;;  %s411_s17 = smul.f32 0.5, %s886_s30  ;;  %p637_p8 = por %p636_p7, %p635_p6 }
  0x23   :  { %v571_v55 = vpop.eup %570  ;;  %582 = vlog2.f32 %v89_v47  ;;  %v93_v56 = vadd.f32 1.0, %v92_v48  ;;  %v107_v57 = vadd.f32 1.0, %v569_v50  ;;  %v110_v60 = vmul.f32 -0.5, %v569_v50 }
  0x24   :  { %584 = vlog2.f32 %v98_v51  ;;  %v102_v59 = vadd.f32 1.0, %v101_v52  ;;  %vm798_vm1 = vcmp.lt.f32.partialorder %v95_v49, 0.0004427343  ;;  %v113_v63 = vand.u32 2147483647, %v569_v50  ;;  %v573_v4 = vpop.eup %572  ;;  %s412_s19 = smul.f32 %s886_s30, %s411_s17  ;;  %p638_p9 = pnand %p637_p8, %p631_p5 }
  0x25   :  { %586 = vlog2.f32 %v107_v57  ;;  %v116_v3 = vadd.f32 1.0, %v571_v55  ;;  %vm802_vm2 = vcmp.lt.f32.partialorder %v104_v53, 0.0004427343  ;;  %v111_v8 = vadd.f32 1.0, %v110_v60  ;;  %v575_v12 = vpop.eup %574 }
  0x26   :  { %v119_v9 = vmul.f32 -0.5, %v571_v55  ;;  %v122_v10 = vand.u32 2147483647, %v571_v55  ;;  %v94_v13 = vmul.f32 %v565_v41, %v93_v56  ;;  %v125_v15 = vadd.f32 1.0, %v573_v4  ;;  %v577_v18 = vpop.eup %576  ;;  %s413_s23 = sadd.f32 0.9189385, %s412_s19 }
  0x27   :  { %588 = vlog2.f32 %v116_v3  ;;  %v128_v16 = vmul.f32 -0.5, %v573_v4  ;;  %v103_v19 = vmul.f32 %v567_v46, %v102_v59  ;;  %vm806_vm3 = vcmp.lt.f32.partialorder %v113_v63, 0.0004427343  ;;  %v579_v24 = vpop.eup %578 }
  0x28   :  { %v120_v21 = vadd.f32 1.0, %v119_v9  ;;  %v131_v23 = vand.u32 2147483647, %v573_v4  ;;  %590 = vlog2.f32 %v125_v15  ;;  %v134_v26 = vadd.f32 1.0, %v575_v12  ;;  %s414_s24 = smul.f32 -64.0, %s413_s23 }
  0x29   :  { %v129_v25 = vadd.f32 1.0, %v128_v16  ;;  %v137_v27 = vmul.f32 -0.5, %v575_v12  ;;  %v112_v28 = vmul.f32 %v569_v50, %v111_v8  ;;  %vm810_vm4 = vcmp.lt.f32.partialorder %v122_v10, 0.0004427343  ;;  %v814_v33 = vpop.eup %580 }
  0x2a   :  { %v140_v31 = vand.u32 2147483647, %v575_v12  ;;  %v143_v32 = vadd.f32 1.0, %v577_v18  ;;  %v121_v34 = vmul.f32 %v571_v55, %v120_v21  ;;  %592 = vlog2.f32 %v134_v26  ;;  %v38_v55 = vld [vmem:[%s996_s2 + $0x28] sm:$0xff] }
  0x2b   :  { %v138_v35 = vadd.f32 1.0, %v137_v27  ;;  %v146_v36 = vmul.f32 -0.5, %v577_v18  ;;  %vm816_vm6 = vcmp.lt.f32.partialorder %v131_v23, 0.0004427343  ;;  %v149_v41 = vand.u32 2147483647, %v577_v18 }
  0x2c   :  { %594 = vlog2.f32 %v143_v32  ;;  %v152_v46 = vadd.f32 1.0, %v579_v24  ;;  %v130_v48 = vmul.f32 %v573_v4, %v129_v25  ;;  %v155_v50 = vmul.f32 -0.5, %v579_v24 }
  0x2d   :  { %v583_v47 = vpop.eup %582  ;;  %v147_v49 = vadd.f32 1.0, %v146_v36  ;;  %v158_v51 = vand.u32 2147483647, %v579_v24  ;;  %vm820_vm7 = vcmp.lt.f32.partialorder %v140_v31, 0.0004427343  ;;  %v375_v56 = vadd.f32 1.0, %v814_v33 }
  0x2e   :  { %v585_v52 = vpop.eup %584  ;;  %v91_v53 = vmul.f32 0.6931472, %v583_v47  ;;  %596 = vlog2.f32 %v152_v46  ;;  %v139_v60 = vmul.f32 %v575_v12, %v138_v35  ;;  %vm825_vm8 = vcmp.lt.f32.partialorder %v149_v41, 0.0004427343 }
  0x2f   :  { %v587_v57 = vpop.eup %586  ;;  %v100_v59 = vmul.f32 0.6931472, %v585_v52  ;;  %v156_v3 = vadd.f32 1.0, %v155_v50  ;;  %v148_v9 = vmul.f32 %v577_v18, %v147_v49  ;;  %v378_v10 = vmul.f32 -0.5, %v814_v33 }
  0x30   :  { %v97_v4 = vsel %vm798_vm1, %v94_v13, %v91_v53  ;;  %v109_v8 = vmul.f32 0.6931472, %v587_v57  ;;  %vm836_vm9 = vcmp.lt.f32.partialorder %v158_v51, 0.0004427343  ;;  %598 = vlog2.f32 %v375_v56 }
  0x31   :  { %v589_v15 = vpop.eup %588  ;;  %v106_v16 = vsel %vm802_vm2, %v103_v19, %v100_v59  ;;  %v161_v21 = vadd.f32 %v97_v4, %v49_v37  ;;  %v381_v23 = vand.u32 2147483647, %v814_v33  ;;  %v157_v0 = vmul.f32 %v579_v24, %v156_v3  ;;  %v34_v19 = vld [vmem:[%s996_s2 + $0x8] sm:$0xff]  ;;  %v37_v59 = vld [vmem:[%s996_s2 + $0x20] sm:$0xff] }
  0x32   :  { %v162_v13 = vadd.f32 %v106_v16, %v50_v38  ;;  %v115_v6 = vsel %vm806_vm3, %v112_v28, %v109_v8  ;;  %v118_v18 = vmul.f32 0.6931472, %v589_v15  ;;  %v591_v37 = vpop.eup %590  ;;  %v379_v27 = vadd.f32 1.0, %v378_v10  ;;  %v35_v38 = vld [vmem:[%s996_s2 + $0x10] sm:$0xff] }
  0x33   :  { %v170_v25 = vmul.f32 %v790_v42, %v161_v21  ;;  %600 = vlog2.f32 %v161_v21  ;;  %v163_v26 = vadd.f32 %v115_v6, %v51_v39  ;;  %v127_v24 = vmul.f32 0.6931472, %v591_v37  ;;  %v39_v21 = vld [vmem:[%s996_s2 + $0x30] sm:$0xff]  ;;  %v40_v37 = vld [vmem:[%s996_s2 + $0x38] sm:$0xff] }
  0x34   :  { %v171_v2 = vmul.f32 %v790_v42, %v162_v13  ;;  %602 = vlog2.f32 %v162_v13  ;;  %v124_v20 = vsel %vm810_vm4, %v121_v34, %v118_v18  ;;  %v593_v28 = vpop.eup %592  ;;  %vm865_vm10 = vcmp.lt.f32.partialorder %v381_v23, 0.0004427343 }
  0x35   :  { %v178_v31 = vadd.f32 %v170_v25, %v33_v62  ;;  %v862_v32 = vadd.f32 %v124_v20, %v52_v43  ;;  %v172_v5 = vmul.f32 %v790_v42, %v163_v26  ;;  %604 = vlog2.f32 %v163_v26 }
  0x36   :  { %v595_v35 = vpop.eup %594  ;;  %v179_v36 = vadd.f32 %v171_v2, %v34_v19  ;;  %v133_v34 = vsel %vm816_vm6, %v130_v48, %v127_v24  ;;  %v136_v41 = vmul.f32 0.6931472, %v593_v28  ;;  %v380_v15 = vmul.f32 %v814_v33, %v379_v27 }
  0x37   :  { %v285_v43 = vmul.f32 %v178_v31, %v178_v31  ;;  %v173_v46 = vmul.f32 %v790_v42, %v862_v32  ;;  %v180_v47 = vadd.f32 %v172_v5, %v35_v38  ;;  %v884_v49 = vadd.f32 %v133_v34, %v53_v44 }
  0x38   :  { %v597_v40 = vpop.eup %596  ;;  %v535_v48 = vpack.c.bf16 %v179_v36, %v178_v31  ;;  %v286_v50 = vmul.f32 %v179_v36, %v179_v36  ;;  %v142_v51 = vsel %vm820_vm7, %v139_v60, %v136_v41  ;;  %v145_v52 = vmul.f32 0.6931472, %v595_v35 }
  0x39   :  { %v293_v53 = vsel %vm187_vm5, %v285_v43, 0.0  ;;  %v181_v56 = vadd.f32 %v173_v46, %v36_v29  ;;  %v287_v57 = vmul.f32 %v180_v47, %v180_v47  ;;  %v166_v11 = vadd.f32 %v142_v51, %v54_v45  ;;  %v368_v29 = vld [vmem:[%s998_s4] sm:$0x1] }
  0x3a   :  { %537 = vmatpush3.bf16.xpose.msk.msra.mxu0 %vm876_vm11, %v535_v48  ;;  %v294_v44 = vsel %vm187_vm5, %v286_v50, 0.0  ;;  %v174_v60 = vmul.f32 %v790_v42, %v884_v49  ;;  %v151_v3 = vsel %vm825_vm8, %v148_v9, %v145_v52  ;;  %v154_v4 = vmul.f32 0.6931472, %v597_v40  ;;  %v599_v8 = vpop.eup %598 }
  0x3b   :  { %v295_v10 = vadd.f32 %v294_v44, %v293_v53  ;;  %538 = vmatprep.subr.bf16.mxu0 %v681_v1  ;;  %v175_v14 = vmul.f32 %v790_v42, %v166_v11  ;;  %v167_v45 = vadd.f32 %v151_v3, %v55_v54  ;;  %v288_v9 = vmul.f32 %v181_v56, %v181_v56 }
  0x3c   :  { %v182_v16 = vadd.f32 %v174_v60, %v37_v59  ;;  %v160_v63 = vsel %vm836_vm9, %v157_v0, %v154_v4  ;;  %v296_v23 = vsel %vm187_vm5, %v287_v57, 0.0  ;;  %v539_v18 = vpack.c.bf16 %v181_v56, %v180_v47 }
  0x3d   :  { %v601_v62 = vpop.eup %600  ;;  %v183_v13 = vadd.f32 %v175_v14, %v38_v55  ;;  %v168_v17 = vadd.f32 %v160_v63, %v56_v58  ;;  %v176_v54 = vmul.f32 %v790_v42, %v167_v45  ;;  %v297_v33 = vadd.f32 %v296_v23, %v295_v10 }
  0x3e   :  { %v603_v6 = vpop.eup %602  ;;  %v289_v12 = vmul.f32 %v182_v16, %v182_v16  ;;  %v298_v0 = vsel %vm187_vm5, %v288_v9, 0.0  ;;  %v377_v19 = vmul.f32 0.6931472, %v599_v8  ;;  %v324_v25 = vmul.f32 0.6931472, %v601_v62 }
  0x3f   :  { %v177_v26 = vmul.f32 %v790_v42, %v168_v17  ;;  %v184_v27 = vadd.f32 %v176_v54, %v39_v21  ;;  %v385_v2 = vstv %s886_s30  ;;  %v605_v22 = vpop.eup %604  ;;  %v290_v58 = vmul.f32 %v183_v13, %v183_v13 }
  0x40   :  { %v299_v38 = vadd.f32 %v298_v0, %v297_v33  ;;  %v300_v20 = vsel %vm187_vm5, %v289_v12, 0.0  ;;  %v383_v24 = vsel %vm865_vm10, %v380_v15, %v377_v19  ;;  %v326_v28 = vmul.f32 0.6931472, %v603_v6  ;;  %v186_v33 = vld [vmem:[%s995_s1] sm:$0xff]  ;;  %s319_s1 = smul.f32 0.5, %s777_s21 }
  0x41   :  { %v185_v31 = vadd.f32 %v177_v26, %v40_v37  ;;  %v291_v5 = vmul.f32 %v184_v27, %v184_v27  ;;  %v384_v35 = vadd.f32 %v383_v24, %v370_v61  ;;  %v302_v36 = vsel %vm187_vm5, %v290_v58, 0.0 }
  0x42   :  { %541 = vmatpush3.bf16.xpose.msk.msra.mxu0 %vm876_vm11, %v539_v18  ;;  %v301_v42 = vadd.f32 %v300_v20, %v299_v38  ;;  %606 = vlog2.f32 %v862_v32  ;;  %v328_v61 = vmul.f32 0.6931472, %v605_v22  ;;  %v339_v43 = vsel %vm187_vm5, %v324_v25, 0.0  ;;  %s320_s18 = smul.f32 %s319_s1, %s777_s21 }
  0x43   :  { %542 = vmatprep.subr.bf16.mxu0 %v681_v1  ;;  %v292_v39 = vmul.f32 %v185_v31, %v185_v31  ;;  %v304_v34 = vsel %vm187_vm5, %v291_v5, 0.0  ;;  %v386_v41 = vmul.f32 %v385_v2, %v384_v35  ;;  %608 = vlog2.f32 %v884_v49 }
  0x44   :  { %v303_v30 = vadd.f32 %v302_v36, %v301_v42  ;;  %610 = vlog2.f32 %v166_v11  ;;  %v340_v40 = vsel %vm187_vm5, %v326_v28, 0.0  ;;  %v543_v32 = vpack.c.bf16 %v183_v13, %v182_v16  ;;  %s321_s22 = sadd.f32 0.9189385, %s320_s18 }
  0x45   :  { %v306_v46 = vsel %vm187_vm5, %v292_v39, 0.0  ;;  %v943_v47 = vadd.f32 %v386_v41, %v368_v29  ;;  %612 = vlog2.f32 %v167_v45  ;;  %v341_v52 = vadd.f32 %v340_v40, %v339_v43 }
  0x46   :  { %v305_v48 = vadd.f32 %v304_v34, %v303_v30  ;;  %614 = vlog2.f32 %v168_v17  ;;  %v342_v53 = vsel %vm187_vm5, %v328_v61, 0.0  ;;  %v547_v44 = vpack.c.bf16 %v185_v31, %v184_v27  ;;  %s322_s5 = smul.f32 -2048.0, %s321_s22 }
  0x47   :  { %v397_v50 = vmul.f32 %v943_v47, %v943_v47  ;;  %616 = vlog2.f32 %v384_v35  ;;  %v343_v57 = vadd.f32 %v342_v53, %v341_v52  ;;  %vm395_vm2 = vcmask 523264  }
  0x48   :  { %v307_v51 = vadd.f32 %v306_v46, %v305_v48  ;;  %v389_v46 = vlaneseq }
  0x49   :  { %v399_v49 = vsel %vm398_vm12, %v397_v50, 0.0 }
  0x4a   :  { %545 = vmatpush3.bf16.xpose.msk.msra.mxu0 %vm876_vm11, %v543_v32  ;;  %308 = vadd.xlane.f32.xlu0 %v307_v51  ;;  %v390_v40 = vshrl.u32 %v389_v46, 7  ;;  %v433_v32 = vand.u32 127, %v389_v46 }
  0x4b   :  { %400 = vadd.xlane.f32.xlu1 %v399_v49  ;;  %546 = vmatprep.subr.bf16.mxu0 %v681_v1 }
  0x4c   :  { %v607_v56 = vpop.eup %606  ;;  %v391_v48 = vsub.s32 0, %v390_v40  ;;  %vm434_vm13 = vcmp.eq.s32.totalorder %v390_v40, 0  ;;  %vm437_vm14 = vcmp.eq.s32.totalorder %v433_v32, 1  ;;  %vm435_vm15 = vcmp.eq.s32.totalorder %v433_v32, 0 }
  0x4d   :  { %v330_v59 = vmul.f32 0.6931472, %v607_v56  ;;  %v609_v11 = vpop.eup %608  ;;  %vm438_vm0 = vmand %vm434_vm13, %vm437_vm14 }
  0x4e   :  { %v611_v55 = vpop.eup %610  ;;  %v332_v60 = vmul.f32 0.6931472, %v609_v11  ;;  %v392_v50 = vrot.slane %v943_v47, %v391_v48  ;;  %vm436_vm1 = vmand %vm434_vm13, %vm435_vm15 }
  0x4f   :  { %v344_v3 = vsel %vm187_vm5, %v330_v59, 0.0  ;;  %v613_v4 = vpop.eup %612  ;;  %v334_v8 = vmul.f32 0.6931472, %v611_v55 }
  0x50   :  { %v345_v10 = vadd.f32 %v344_v3, %v343_v57  ;;  %v615_v14 = vpop.eup %614  ;;  %v336_v45 = vmul.f32 0.6931472, %v613_v4  ;;  %v346_v15 = vsel %vm187_vm5, %v332_v60, 0.0 }
  0x51   :  { %v617_v16 = vpop.eup %616  ;;  %v338_v21 = vmul.f32 0.6931472, %v615_v14  ;;  %v348_v1 = vsel %vm187_vm5, %v334_v8, 0.0 }
  0x52   :  { %v347_v63 = vadd.f32 %v346_v15, %v345_v10  ;;  %549 = vmatpush3.bf16.xpose.msk.msra.mxu0 %vm876_vm11, %v547_v44  ;;  %v350_v9 = vsel %vm187_vm5, %v336_v45, 0.0  ;;  %v416_v23 = vmul.f32 0.6931472, %v617_v16 }
  0x53   :  { %v352_v13 = vsel %vm187_vm5, %v338_v21, 0.0 }
  0x54   :  { %v349_v62 = vadd.f32 %v348_v1, %v347_v63  ;;  %v417_v17 = vsel %vm398_vm12, %v416_v23, 0.0 }
  0x55   :  { %418 = vadd.xlane.f32.xlu1 %v417_v17 }
  0x56   :  { %v351_v54 = vadd.f32 %v350_v9, %v349_v62 }
  0x58   :  { %v353_v6 = vadd.f32 %v352_v13, %v351_v54 }
  0x59   :  { %532 = vmatmul.mubr.msk.f32.vlgmr.msra.gmra.mrb[0].mxu0 %vm187_vm5, %v186_v33 }
  0x5a   :  { %354 = vadd.xlane.f32.xlu0 %v353_v6 }
  0xd7   :  { %v309_v7 = vpop.xlane.xlu0 %308 }
  0xd8   :  { %v310_v18 = vrot.slane %v309_v7, 4  ;;  %v401_v0 = vpop.xlane.xlu1 %400 }
  0xd9   :  { %v402_v19 = vrot.slane %v401_v0, 4 }
  0xda   :  { %v311_v37 = vadd.f32 %v310_v18, %v309_v7 }
  0xdb   :  { %v403_v27 = vadd.f32 %v402_v19, %v401_v0 }
  0xdc   :  { %v312_v12 = vrot.slane %v311_v37, 2 }
  0xdd   :  { %v404_v38 = vrot.slane %v403_v27, 2 }
  0xde   :  { %v313_v25 = vadd.f32 %v312_v12, %v311_v37 }
  0xdf   :  { %v405_v5 = vadd.f32 %v404_v38, %v403_v27 }
  0xe0   :  { %v314_v26 = vrot.slane %v313_v25, 1 }
  0xe1   :  { %v406_v29 = vrot.slane %v405_v5, 1 }
  0xe2   :  { %v315_v2 = vadd.f32 %v314_v26, %v313_v25  ;;  %v419_v22 = vpop.xlane.xlu1 %418 }
  0xe3   :  { %v420_v58 = vrot.slane %v419_v22, 4  ;;  %v407_v30 = vadd.f32 %v406_v29, %v405_v5 }
  0xe4   :  { %550 = vpush %v315_v2 }
  0xe5   :  { %v421_v20 = vadd.f32 %v420_v58, %v419_v22 }
  0xe7   :  { %v355_v24 = vpop.xlane.xlu0 %354  ;;  %v422_v31 = vrot.slane %v421_v20, 2 }
  0xe8   :  { %v356_v28 = vrot.slane %v355_v24, 4 }
  0xe9   :  { %v423_v42 = vadd.f32 %v422_v31, %v421_v20 }
  0xea   :  { %v357_v35 = vadd.f32 %v356_v28, %v355_v24 }
  0xeb   :  { %v424_v34 = vrot.slane %v423_v42, 1 }
  0xec   :  { %v358_v36 = vrot.slane %v357_v35, 2 }
  0xed   :  { %v425_v43 = vadd.f32 %v424_v34, %v423_v42 }
  0xee   :  { %v359_v39 = vadd.f32 %v358_v36, %v357_v35 }
  0xf0   :  { %v360_v41 = vrot.slane %v359_v39, 1 }
  0xf2   :  { %v361_v61 = vadd.f32 %v360_v41, %v359_v39 }
  0xf4   :  { %552 = vpush %v361_v61 }
  0xf5   :  { %554 = vpush %v407_v30 }
  0xf6   :  { %556 = vpush %v425_v43 }
 0x115   :  { %s551_s20 = spop %550 }
 0x116   :  { %s317_s3 = smul.f32 0.5, %s551_s20 }
 0x118   :  { %s318_s25 = ssub.f32 -1881.9861, %s317_s3 }
 0x125   :  { %s553_s26 = spop %552 }
 0x126   :  { %s363_s27 = ssub.f32 %s322_s5, %s553_s26  ;;  %s555_s28 = spop %554 }
 0x127   :  { %s409_s29 = smul.f32 0.5, %s555_s28  ;;  %s557_s0 = spop %556 }
 0x128   :  { %s427_s21 = ssub.f32 %s414_s24, %s557_s0 }
 0x129   :  { %s410_s30 = ssub.f32 -58.812065, %s409_s29 }
 0x12a   :  { %s429_s8 = sadd.f32 %s427_s21, %s363_s27 }
 0x12b   :  { %s428_s11 = sadd.f32 %s410_s30, %s318_s25 }
 0x12c   :  { %v439_v51 = vstv %s429_s8  ;;  %v281_v52 = vpop.f32.mrb[0].mxu0 }
 0x12d   :  { %v441_v49 = vstv %s428_s11  ;;  %v440_v53 = vsel %vm438_vm0, %v439_v51, 0.0  ;;  %v394_v56 = vadd.f32 %v392_v50, %v281_v52  ;;  %v533_v57 = vpop.f32.mrb[1].mxu0 }
 0x12e   :  { %v442_v59 = vsel %vm436_vm1, %v441_v49, %v440_v53 }
 0x12f   :  { %396 = vst.msk [vmem:[#allocation4] sm:$0xff] %vm395_vm2, %v394_v56  ;;  %443 = vst [vmem:[#allocation6] sm:$0xff] %v442_v59 }
 0x130   :  { %641 = shalt.err (!%p638_p9)
}
 0x131   :  { %s642_s4 = scalar_lea.hbm %s1000_s6, 128 }
 0x132   :  { %p643_p10 = scmp.ne.s32.totalorder %s1000_s6, %s642_s4  ;;  %p646_p11 = scmp.lt.u32.totalorder %s642_s4, %s1000_s6 }
 0x134   :  { %p648_p12 = pnand %p646_p11, %p643_p10 }
 0x136   :  { %651 = shalt.err (!%p648_p12)
}
 0x137   :  { %477 = dma.vmem_to_hbm [thread:$0]  %s475_s10, 128, %s1000_s6, [#allocation5]  }
 0x138   :  { %s652_s22 = scalar_lea.vmem %s485_s13, 128  ;;  %p657_p0 = scmp.lt.s32.totalorder %s485_s13, %s485_s13 }
 0x139   :  { %p653_p13 = scmp.ne.s32.totalorder %s485_s13, %s652_s22  ;;  %p658_p1 = scmp.lt.s32.totalorder %s652_s22, %s652_s22 }
 0x13b   :  { %p659_p2 = por %p658_p1, %p657_p0 }
 0x13d   :  { %p660_p3 = pnand %p659_p2, %p653_p13 }
 0x13f   :  { %663 = shalt.err (!%p660_p3)
}
 0x140   :  { %s664_s5 = scalar_lea.hbm %s1001_s7, 128 }
 0x141   :  { %p665_p4 = scmp.ne.s32.totalorder %s1001_s7, %s664_s5  ;;  %p668_p5 = scmp.lt.u32.totalorder %s664_s5, %s1001_s7 }
 0x143   :  { %p670_p6 = pnand %p668_p5, %p665_p4 }
 0x145   :  { %673 = shalt.err (!%p670_p6)
}
 0x146   :  { %487 = dma.vmem_to_hbm [thread:$0]  %s485_s13, 128, %s1001_s7, [#allocation7]  }
 0x147   :  { %676 = dma.done.wait [#allocation5], 128  }
 0x148   :  { %677 = vsyncadd [#allocation5], 4294967168 }
 0x149   :  { %678 = dma.done.wait [#allocation7], 128  }
 0x14a   :  { %679 = vsyncadd [#allocation7], 4294967168 }
 0x14b   :  { %494 = vsyncpa [#allocation5], 1 }
 0x14c   :  { %495 = vsyncpa [#allocation7], 1 }

</bundles_post_ra>
